<compile_context>
chip_gen: v6e
topology: v6e:2x2x1
jax: 0.10.0
libtpu: 0.0.40
codegen_flags: <defaults>
</compile_context>

<pallas_src>
import math

import jax
import jax.numpy as jnp
from jax.experimental import pallas as pl
from jax.experimental.pallas import tpu as pltpu


def _concat_lane_kernel(*refs):
    """Inputs are (tp, w_i) tiles; output is a (tp, sum(w_i)) tile.

    Each input is placed at its static lane-axis offset of the output tile.
    """
    out_ref = refs[-1]
    off = 0
    for r in refs[:-1]:
        w = r.shape[1]
        out_ref[:, off:off + w] = r[...]
        off += w


def _concat_row_kernel(*refs):
    """Inputs are (rows_i, tn) tiles; output is a (sum(rows_i), tn) tile.

    Each input is placed at its static row-axis offset of the output tile.
    """
    out_ref = refs[-1]
    off = 0
    for r in refs[:-1]:
        h = r.shape[0]
        out_ref[off:off + h, :] = r[...]
        off += h


def _vmem_limits():
    """Return (vmem_limit_bytes, double-buffered working-set budget).

    Derived from the physical VMEM of the current generation:
      v5e/v6e (128 MiB) -> limit 64 MiB, budget 48 MiB
      v7x     (64 MiB)  -> limit 32 MiB, budget 24 MiB
    """
    try:
        cap = int(pltpu.get_tpu_info().vmem_capacity_bytes)
    except Exception:
        cap = 128 * 1024 * 1024
    limit = max(32 * 1024 * 1024, min(cap // 2, 96 * 1024 * 1024))
    budget = (3 * limit) // 4
    return limit, budget


def _sublane_multiple(dtype):
    """Row-tile granularity: 8 for 4-byte, 16 for 2-byte, 32 for 1-byte dtypes."""
    item = jnp.dtype(dtype).itemsize
    return max(8, 32 // max(1, item))


def _pick_row_tile(pre, out_cols, itemsize, sub, budget):
    """Row tile for the (pre, out_cols) view; None if nothing fits the budget."""
    bytes_per_row = 2 * out_cols * itemsize        # inputs + output, per row
    cap = budget // max(1, 2 * bytes_per_row)      # x2 for double buffering
    if cap < 1:
        return None
    if pre <= sub:
        return pre if cap >= pre else None
    cap = (cap // sub) * sub
    if cap < sub:
        return None
    return min(cap, pre)                           # cdiv grid masks ragged tail


def _pick_lane_tile(post, total_rows, itemsize, budget):
    """Lane tile for the (total_rows, post) view; None if nothing fits."""
    bytes_per_col = 2 * total_rows * itemsize      # inputs + output, per lane
    cap = budget // max(1, 2 * bytes_per_col)      # x2 for double buffering
    if cap < 1:
        return None
    if post <= 128:
        return post if cap >= post else None
    cap = (cap // 128) * 128
    if cap < 128:
        return None
    return min(cap, post)                          # cdiv grid masks ragged tail


def concat_pallas(xs, dimension=0):
    """Pallas equivalent of torch.cat(xs, dim=dimension)."""
    xs = [jnp.asarray(x) for x in xs]
    assert len(xs) >= 1
    ref_t = next((x for x in xs if x.size != 0), xs[0])
    nd = ref_t.ndim
    assert nd >= 1, "torch.cat does not accept 0-dim tensors"
    d = dimension % nd
    dtype = ref_t.dtype
    other = ref_t.shape[:d] + ref_t.shape[d + 1:]

    kept = []
    for x in xs:
        if x.size == 0 and (x.ndim != nd or x.shape[:d] + x.shape[d + 1:] != other):
            continue  # legacy torch.cat: skip mismatched empty tensors
        assert x.dtype == dtype, "torch.cat requires matching dtypes"
        assert x.ndim == nd and x.shape[:d] + x.shape[d + 1:] == other, \
            "non-concat dims must match"
        kept.append(x)

    sizes = [x.shape[d] for x in kept]
    total = sum(sizes)
    out_shape_full = list(ref_t.shape)
    out_shape_full[d] = total

    pre = math.prod(ref_t.shape[:d])
    post = math.prod(ref_t.shape[d + 1:])

    # Degenerate / trivial cases.
    if total == 0 or pre == 0 or post == 0:
        return jnp.zeros(out_shape_full, dtype)
    xs_nz = [x for x in kept if x.shape[d] > 0]
    if len(xs_nz) == 1:
        return xs_nz[0].reshape(out_shape_full)

    itemsize = jnp.dtype(dtype).itemsize
    vmem_limit, budget = _vmem_limits()
    total_bytes = 2 * pre * total * post * itemsize    # read everything + write everything
    cparams = pltpu.CompilerParams(
        dimension_semantics=("parallel",), vmem_limit_bytes=vmem_limit)
    cost = pl.CostEstimate(flops=0, transcendentals=0, bytes_accessed=total_bytes)

    if pre == 1:
        # dim-0 style concat: stack (size_i, post) row blocks -> (total, post),
        # grid pipelines over lane chunks of `post`.
        xs2 = [x.reshape(x.shape[d], post) for x in xs_nz]
        tn = _pick_lane_tile(post, total, itemsize, budget)
        if tn is None:
            # TODO(synk): oversized row-concat needs a manual-DMA (pl.ANY) path;
            # fall back to XLA rather than exceeding the VMEM limit.
            return jnp.concatenate(xs_nz, axis=d)
        out2 = pl.pallas_call(
            _concat_row_kernel,
            out_shape=jax.ShapeDtypeStruct((total, post), dtype),
            grid=(pl.cdiv(post, tn),),
            in_specs=[pl.BlockSpec((v.shape[0], tn), lambda j: (0, j)) for v in xs2],
            out_specs=pl.BlockSpec((total, tn), lambda j: (0, j)),
            compiler_params=cparams,
            cost_estimate=cost,
        )(*xs2)
        return out2.reshape(out_shape_full)

    # General case: lane-dense 2-D collapse, concat offsets on the lane axis,
    # grid pipelines over row tiles (ragged last block masked by Pallas).
    xs2 = [x.reshape(pre, x.shape[d] * post) for x in xs_nz]
    widths = [v.shape[1] for v in xs2]
    out_cols = total * post
    sub = _sublane_multiple(dtype)
    tp = _pick_row_tile(pre, out_cols, itemsize, sub, budget)
    if tp is None:
        # TODO(synk): oversized lane-concat needs a manual-DMA (pl.ANY) path;
        # fall back to XLA rather than exceeding the VMEM limit.
        return jnp.concatenate(xs_nz, axis=d)
    out2 = pl.pallas_call(
        _concat_lane_kernel,
        out_shape=jax.ShapeDtypeStruct((pre, out_cols), dtype),
        grid=(pl.cdiv(pre, tp),),
        in_specs=[pl.BlockSpec((tp, w), lambda i: (i, 0)) for w in widths],
        out_specs=pl.BlockSpec((tp, out_cols), lambda i: (i, 0)),
        compiler_params=cparams,
        cost_estimate=cost,
    )(*xs2)
    return out2.reshape(out_shape_full)


class Concat:
    """Mirror of the PyTorch module's interface."""

    def __init__(self, dimension=0):
        self.d = dimension

    def __call__(self, x):
        return concat_pallas(x, self.d)


if __name__ == "__main__":
    key = jax.random.PRNGKey(0)
    k1, k2, k3, k4 = jax.random.split(key, 4)

    # NCHW feature maps (small shapes).
    a = jax.random.normal(k1, (2, 4, 16, 16), dtype=jnp.float32)
    b = jax.random.normal(k2, (2, 6, 16, 16), dtype=jnp.float32)
    c = jax.random.normal(k3, (2, 4, 16, 16), dtype=jnp.float32)

    # Default module behaviour: dimension=0 (pre == 1 row-concat path).
    out0 = Concat(dimension=0)([a, c])
    jax.block_until_ready(out0)
    assert out0.shape == (4, 4, 16, 16)
    assert jnp.array_equal(out0, jnp.concatenate([a, c], axis=0))

    # Typical usage: channel concat (dimension=1) with mixed channel counts.
    out1 = Concat(dimension=1)([a, b, c])
    jax.block_until_ready(out1)
    assert out1.shape == (2, 14, 16, 16)
    assert jnp.array_equal(out1, jnp.concatenate([a, b, c], axis=1))

    # Last-axis concat (post == 1 path).
    d_small = jax.random.normal(k4, (2, 4, 16, 8), dtype=jnp.float32)
    out2 = Concat(dimension=-1)([a, d_small])
    jax.block_until_ready(out2)
    assert out2.shape == (2, 4, 16, 24)
    assert jnp.array_equal(out2, jnp.concatenate([a, d_small], axis=-1))

    # bf16 channel concat exercises the dtype-aware (16-row) tile rounding.
    e1 = a.astype(jnp.bfloat16)
    e2 = b.astype(jnp.bfloat16)
    out3 = Concat(dimension=1)([e1, e2])
    jax.block_until_ready(out3)
    assert out3.shape == (2, 10, 16, 16)
    assert jnp.array_equal(out3, jnp.concatenate([e1, e2], axis=1))

    print("KERNEL_OK")
</pallas_src>

<mosaic_0001>
module attributes {stable_mosaic.version = 11 : i64} {
  func.func @_concat_row_kernel(%arg0: i32, %arg1: memref<2x1024xf32, #tpu.memory_space<vmem>>, %arg2: memref<2x1024xf32, #tpu.memory_space<vmem>>, %arg3: memref<4x1024xf32, #tpu.memory_space<vmem>>) attributes {dimension_semantics = [#tpu.dimension_semantics<parallel>], iteration_bounds = array<i64: 1>, scalar_prefetch = 0 : i64, scratch_operands = 0 : i64, tpu.core_type = #tpu.core_type<tc>, window_params = [{transform_indices = @transform_0, window_bounds = array<i64: 2, 1024>}, {transform_indices = @transform_1, window_bounds = array<i64: 2, 1024>}, {transform_indices = @transform_2, window_bounds = array<i64: 4, 1024>}]} {
    %c0 = arith.constant 0 : index
    %c0_0 = arith.constant 0 : index
    %0 = vector.load %arg1[%c0, %c0_0] : memref<2x1024xf32, #tpu.memory_space<vmem>>, vector<2x1024xf32>
    %c0_1 = arith.constant 0 : index
    %c0_2 = arith.constant 0 : index
    %1 = vector.load %arg3[%c0_1, %c0_2] : memref<4x1024xf32, #tpu.memory_space<vmem>>, vector<2x1024xf32>
    tpu.vector_store %arg3[%c0_1, %c0_2], %0 {strides = array<i32>} : memref<4x1024xf32, #tpu.memory_space<vmem>>, vector<2x1024xf32>,
    %c0_3 = arith.constant 0 : index
    %c0_4 = arith.constant 0 : index
    %2 = vector.load %arg2[%c0_3, %c0_4] : memref<2x1024xf32, #tpu.memory_space<vmem>>, vector<2x1024xf32>
    %c2 = arith.constant 2 : index
    %c0_5 = arith.constant 0 : index
    %3 = vector.load %arg3[%c2, %c0_5] : memref<4x1024xf32, #tpu.memory_space<vmem>>, vector<2x1024xf32>
    tpu.vector_store %arg3[%c2, %c0_5], %2 {strides = array<i32>} : memref<4x1024xf32, #tpu.memory_space<vmem>>, vector<2x1024xf32>,
    return
  }
  func.func @transform_0(%arg0: i32) -> (i32, i32) {
    %c0_i32 = arith.constant 0 : i32
    %c0_i32_0 = arith.constant 0 : i32
    return %c0_i32, %arg0 : i32, i32
  }
  func.func @transform_1(%arg0: i32) -> (i32, i32) {
    %c0_i32 = arith.constant 0 : i32
    %c0_i32_0 = arith.constant 0 : i32
    return %c0_i32, %arg0 : i32, i32
  }
  func.func @transform_2(%arg0: i32) -> (i32, i32) {
    %c0_i32 = arith.constant 0 : i32
    %c0_i32_0 = arith.constant 0 : i32
    return %c0_i32, %arg0 : i32, i32
  }
}

</mosaic_0001>

<bundles_post_ra>
// kernel: tpu_custom_call.1
= control target key start
LH: loop header
LB: loop body
LE: loop exit
PB: predicated region body
PF: predicated region fallthrough
CT: control target
= control target key end

     0   :  { %7 = vsyncpa [#allocation3], 0  ;;  %s242_s0 = inlined_call_operand.hbm [shape: f32[2,1024], index: 0, kind: input, shape index: {}]   ;;  %s243_s1 = inlined_call_operand.hbm [shape: f32[2,1024], index: 1, kind: input, shape index: {}]   ;;  %s244_s2 = inlined_call_operand.hbm [shape: f32[4,1024], index: 2, kind: output, shape index: {}]  }
   0x1   :  { %8 = vsyncpa [#allocation6], 0 }
   0x2   :  { %9 = vsyncpa [#allocation4], 0  ;;  %s215_s9 = smov [#allocation2]   ;;  %s216_s11 = smov [#allocation5]  }
   0x3   :  { %s16_s10 = sshll.u32 %s215_s9, 4  ;;  %s26_s12 = sshll.u32 %s216_s11, 4  ;;  %s17_s10 = int_to_ptr.vmem [resolvable:$true] %s16_s10  ;;  %s27_s12 = int_to_ptr.vmem [resolvable:$true] %s26_s12 }
   0x4   :  { %s157_s13 = scalar_lea.vmem %s17_s10, 256  ;;  %p162_p1 = scmp.lt.s32.totalorder %s17_s10, %s17_s10 }
   0x5   :  { %p158_p0 = scmp.ne.s32.totalorder %s17_s10, %s157_s13  ;;  %p163_p2 = scmp.lt.s32.totalorder %s157_s13, %s157_s13 }
   0x7   :  { %p164_p3 = por %p163_p2, %p162_p1 }
   0x9   :  { %p165_p4 = pnand %p164_p3, %p158_p0 }
   0xb   :  { %168 = shalt.err (!%p165_p4)
}
   0xc   :  { %19 = dma.hbm_to_vmem [thread:$0]  %s242_s0, 256, %s17_s10, [#allocation3]  }
   0xd   :  { %s177_s16 = scalar_lea.vmem %s27_s12, 256  ;;  %p182_p6 = scmp.lt.s32.totalorder %s27_s12, %s27_s12 }
   0xe   :  { %p178_p5 = scmp.ne.s32.totalorder %s27_s12, %s177_s16  ;;  %p183_p7 = scmp.lt.s32.totalorder %s177_s16, %s177_s16 }
  0x10   :  { %p184_p8 = por %p183_p7, %p182_p6 }
  0x12   :  { %p185_p9 = pnand %p184_p8, %p178_p5 }
  0x14   :  { %188 = shalt.err (!%p185_p9)
}
  0x15   :  { %29 = dma.hbm_to_vmem [thread:$0]  %s243_s1, 256, %s27_s12, [#allocation6]  }
  0x16   :  { %209 = dma.done.wait [#allocation3], 256  }
  0x17   :  { %210 = vsyncadd [#allocation3], 4294967040 }
  0x18   :  { %211 = dma.done.wait [#allocation6], 256  }
  0x19   :  { %212 = vsyncadd [#allocation6], 4294967040  ;;  %s217_s19 = smov [#allocation7]   ;;  %v36_v0 = vld [vmem:[#allocation2] sm:$0xff]  ;;  %v37_v1 = vld [vmem:[#allocation2 + $0x8] sm:$0xff] }
  0x1a   :  { %s126_s20 = sshll.u32 %s217_s19, 4  ;;  %v78_v2 = vld [vmem:[#allocation5] sm:$0xff]  ;;  %136 = vst.sshfl [vmem:[#allocation7] sm:$0xf pattern:$0x76325410] %v36_v0  ;;  %v40_v3 = vcombine.high %v36_v0, %v36_v0  ;;  %v55_v4 = vcombine.high %v37_v1, %v37_v1  ;;  %s127_s20 = int_to_ptr.vmem [resolvable:$true] %s126_s20 }
  0x1b   :  { %138 = vst.sshfl [vmem:[#allocation7 + $0x10] sm:$0xf pattern:$0x76325410] %v37_v1  ;;  %v82_v5 = vcombine.low %v78_v2, %v78_v2  ;;  %v79_v6 = vld [vmem:[#allocation5 + $0x8] sm:$0xff]  ;;  %s189_s0 = scalar_lea.vmem %s127_s20, 512  ;;  %p194_p11 = scmp.lt.s32.totalorder %s127_s20, %s127_s20 }
  0x1c   :  { %141 = vst.sshfl [vmem:[#allocation7 + $0x8] sm:$0xf0 pattern:$0x76325410] %v78_v2  ;;  %v97_v7 = vcombine.low %v79_v6, %v79_v6  ;;  %p190_p10 = scmp.ne.s32.totalorder %s127_s20, %s189_s0  ;;  %p195_p12 = scmp.lt.s32.totalorder %s189_s0, %s189_s0 }
  0x1d   :  { %143 = vst.sshfl [vmem:[#allocation7 + $0x18] sm:$0xf0 pattern:$0x76325410] %v79_v6 }
  0x1e   :  { %137 = vst.sshfl [vmem:[#allocation7 + $0x8] sm:$0xf pattern:$0x76325410] %v40_v3  ;;  %p196_p13 = por %p195_p12, %p194_p11 }
  0x1f   :  { %139 = vst.sshfl [vmem:[#allocation7 + $0x18] sm:$0xf pattern:$0x76325410] %v55_v4 }
  0x20   :  { %140 = vst.sshfl [vmem:[#allocation7] sm:$0xf0 pattern:$0x76325410] %v82_v5  ;;  %p197_p0 = pnand %p196_p13, %p190_p10 }
  0x21   :  { %142 = vst.sshfl [vmem:[#allocation7 + $0x10] sm:$0xf0 pattern:$0x76325410] %v97_v7 }
  0x22   :  { %200 = shalt.err (!%p197_p0)
}
  0x23   :  { %129 = dma.vmem_to_hbm [thread:$0]  %s127_s20, 512, %s244_s2, [#allocation4]  }
  0x24   :  { %213 = dma.done.wait [#allocation4], 512  }
  0x25   :  { %214 = vsyncadd [#allocation4], 4294966784 }
  0x26   :  { %133 = vsyncpa [#allocation3], 1 }
  0x27   :  { %134 = vsyncpa [#allocation6], 1 }
  0x28   :  { %135 = vsyncpa [#allocation4], 1 }

</bundles_post_ra>
